<compile_context>
chip_gen: v7x
topology: tpu7x:2x2x1
jax: 0.10.0
libtpu: 0.0.40
codegen_flags: <defaults>
</compile_context>

<pallas_src>
import functools

import jax
import jax.numpy as jnp
from jax.experimental import pallas as pl
from jax.experimental.pallas import tpu as pltpu

ALPHA = 0.2  # LeakyReLU negative slope


def _leaky(v):
    return jnp.where(v > 0, v, ALPHA * v)


def gmn_kernel(gs_ref,                                   # (B_pad,) int32 scalar prefetch (SMEM)
               x_ref, adj_ref,                           # (TB, N, Fin), (TB, N, N)
               w1_ref, b1_ref, w2_ref, b2_ref, wa_ref, ba_ref,
               cent_aug_ref,                             # (H*K0, D+2)  [-2c | |c|^2 | 1]
               hp_ref, q_ref, newadj_ref, newfeat_ref, hl_ref,
               *, num_heads, num_centroids, tb):
    H = num_heads
    K0 = num_centroids
    TB = tb
    bidx = pl.program_id(0)

    N = x_ref.shape[1]
    Fin = x_ref.shape[2]
    D = hp_ref.shape[1]
    n_cols = TB * N

    # ---------------- node / adjacency MLPs, flattened over (TB*N) to fill the MXU M dim ------
    x = x_ref[...].reshape(n_cols, Fin)
    adj_full = adj_ref[...]                               # (TB, N, N)
    adj_flat = adj_full.reshape(n_cols, N)
    x1 = _leaky(jnp.dot(x, w1_ref[...], preferred_element_type=jnp.float32) + b1_ref[...])
    x2 = _leaky(jnp.dot(x1, w2_ref[...], preferred_element_type=jnp.float32) + b2_ref[...])
    a1 = _leaky(jnp.dot(adj_flat, wa_ref[...], preferred_element_type=jnp.float32) + ba_ref[...])
    h = jnp.concatenate([x2, a1], axis=-1)                # (TB*N, D) kept in registers

    # lane-dense h_prime output slab (D, TB*N); wrapper transposes back (layout plumbing only)
    hp_ref[0] = h.T

    # ---------------- per-graph node masks from scalar-prefetched graph_sizes -----------------
    iota_n = jax.lax.broadcasted_iota(jnp.int32, (1, N), 1)
    m_rows = [(iota_n < gs_ref[bidx * TB + t]).astype(jnp.float32) for t in range(TB)]  # (1,N)
    m_cols = jnp.concatenate(m_rows, axis=1)                          # (1, TB*N)
    m_b = jnp.concatenate([r[None] for r in m_rows], axis=0)          # (TB, 1, N)

    # ---------------- Student-t assignment: ONE augmented MXU matmul --------------------------
    # dist = |c|^2 + |x|^2 - 2 c.x  via  [-2c | |c|^2 | 1] . [x | 1 | sum(x^2)]
    hsq = jnp.sum(h * h, axis=-1, keepdims=True)                      # (TB*N, 1)
    h_aug = jnp.concatenate([h, jnp.ones((n_cols, 1), jnp.float32), hsq], axis=-1)
    dist = jnp.einsum('kd,nd->kn', cent_aug_ref[...], h_aug,
                      preferred_element_type=jnp.float32)             # (H*K0, TB*N)
    dist = dist * m_cols

    # per-head normalize over centroids (exact division), head-mean pool ('mean'), mask
    q_acc = jnp.zeros((K0, n_cols), jnp.float32)
    for hd in range(H):                      # tiny static unroll; heavy math already vectorized
        qh = pl.reciprocal(1.0 + dist[hd * K0:(hd + 1) * K0, :], approx=True)   # nu = 1
        q_acc = q_acc + qh / jnp.sum(qh, axis=0, keepdims=True)
    q = q_acc * (m_cols * (1.0 / H))

    # softmax over the centroid axis (exact denominator), re-mask
    e = jnp.exp(q - jnp.max(q, axis=0, keepdims=True))
    q = (e / jnp.sum(e, axis=0, keepdims=True)) * m_cols              # (K0, TB*N)

    q_ref[0] = q                                                      # lane-dense store

    # ---------------- per-graph (batched) part -------------------------------------------------
    q_b = jnp.stack([q[:, t * N:(t + 1) * N] for t in range(TB)], axis=0)   # (TB, K0, N)
    h_b = h.reshape(TB, N, D)                                                # (TB, N, D)

    # target distribution p and hardening (KL) loss — exact division on this path
    p = (q_b * q_b) / jnp.sum(q_b, axis=-1, keepdims=True)            # (TB, K0, N)
    denom = jnp.sum(p, axis=1, keepdims=True)                         # (TB, 1, N)
    denom = jnp.where(m_b > 0, denom, 1.0)                            # denom[~mask] = 1
    p = p / denom
    p1 = p + 1.0 - m_b
    q1 = q_b + 1.0 - m_b
    hl = jnp.where(m_b > 0, p1 * jnp.log(p1 / q1), 0.0)
    hl_ref[...] = jnp.full((1, 1, 1), 100.0 * jnp.sum(hl), jnp.float32)   # per-block partial

    # pooled adjacency / features, batched dot_general over the TB graphs
    q_adj = jnp.einsum('tkn,tnm->tkm', q_b, adj_full,
                       preferred_element_type=jnp.float32)            # (TB, K0, N)
    newadj_ref[...] = jnp.einsum('tkn,tjn->tkj', q_adj, q_b,
                                 preferred_element_type=jnp.float32)  # (TB, K0, K0)
    newfeat_ref[...] = jnp.einsum('tkn,tnd->tkd', q_b, h_b,
                                  preferred_element_type=jnp.float32)  # (TB, K0, D)


def gmn_forward(params, x_node, adj, graph_sizes, *, num_centroids, cluster_heads,
                pos_hiddim, block_graphs=8):
    B, N, Fin = x_node.shape
    hidden = params['w1t'].shape[1]
    hid2 = hidden // 2
    D = hid2 + pos_hiddim
    K0 = num_centroids[0]
    H = cluster_heads

    # batch blocking: TB graphs per grid step; pad B up to a multiple of TB (pad graphs have
    # size 0 -> fully masked -> zero loss contribution; their rows are sliced off below)
    TB = max(1, min(block_graphs, B))
    nb = pl.cdiv(B, TB)
    B_pad = nb * TB
    gs = graph_sizes.astype(jnp.int32)
    if B_pad != B:
        pad = B_pad - B
        x_node = jnp.pad(x_node, ((0, pad), (0, 0), (0, 0)))
        adj = jnp.pad(adj, ((0, pad), (0, 0), (0, 0)))
        gs = jnp.pad(gs, (0, pad))

    # cluster-layer-0 centroid slab, pre-augmented so the in-kernel distance is one matmul
    cent = params['centroids'][:, :K0 * D].reshape(H * K0, D).astype(jnp.float32)
    csq = jnp.sum(cent * cent, axis=-1, keepdims=True)
    cent_aug = jnp.concatenate([-2.0 * cent, csq, jnp.ones((H * K0, 1), jnp.float32)], axis=-1)

    kernel = functools.partial(gmn_kernel, num_heads=H, num_centroids=K0, tb=TB)

    hp_t, q_t, new_adj, new_feat, hl = pl.pallas_call(
        kernel,
        out_shape=(
            jax.ShapeDtypeStruct((nb, D, TB * N), jnp.float32),    # h_prime (lane-dense, T)
            jax.ShapeDtypeStruct((nb, K0, TB * N), jnp.float32),   # q (lane-dense)
            jax.ShapeDtypeStruct((B_pad, K0, K0), jnp.float32),    # new_adj
            jax.ShapeDtypeStruct((B_pad, K0, D), jnp.float32),     # new_feat
            jax.ShapeDtypeStruct((nb, 1, 1), jnp.float32),         # per-block partial loss
        ),
        grid_spec=pltpu.PrefetchScalarGridSpec(
            num_scalar_prefetch=1,
            grid=(nb,),
            in_specs=[
                pl.BlockSpec((TB, N, Fin), lambda b, g: (b, 0, 0)),
                pl.BlockSpec((TB, N, N), lambda b, g: (b, 0, 0)),
                pl.BlockSpec((Fin, hidden), lambda b, g: (0, 0)),
                pl.BlockSpec((1, hidden), lambda b, g: (0, 0)),
                pl.BlockSpec((hidden, hid2), lambda b, g: (0, 0)),
                pl.BlockSpec((1, hid2), lambda b, g: (0, 0)),
                pl.BlockSpec((N, pos_hiddim), lambda b, g: (0, 0)),
                pl.BlockSpec((1, pos_hiddim), lambda b, g: (0, 0)),
                pl.BlockSpec((H * K0, D + 2), lambda b, g: (0, 0)),
            ],
            out_specs=(
                pl.BlockSpec((1, D, TB * N), lambda b, g: (b, 0, 0)),
                pl.BlockSpec((1, K0, TB * N), lambda b, g: (b, 0, 0)),
                pl.BlockSpec((TB, K0, K0), lambda b, g: (b, 0, 0)),
                pl.BlockSpec((TB, K0, D), lambda b, g: (b, 0, 0)),
                pl.BlockSpec((1, 1, 1), lambda b, g: (b, 0, 0)),
            ),
        ),
        # per-block partial loss => no cross-step carry => batch axis can shard across TCs
        compiler_params=pltpu.CompilerParams(dimension_semantics=("parallel",)),
    )(gs, x_node, adj, params['w1t'], params['b1'], params['w2t'], params['b2'],
      params['wat'], params['ba'], cent_aug)

    # layout plumbing back to the reference output shapes (tiny reshapes/transposes in XLA)
    h_prime = jnp.transpose(hp_t, (0, 2, 1)).reshape(B_pad, N, D)[:B]
    q = jnp.transpose(q_t.reshape(nb, K0, TB, N), (0, 2, 1, 3)).reshape(B_pad, K0, N)[:B]
    del q  # cluster_block's q is not part of the forward() return tuple
    new_adj = new_adj[:B]
    new_feat = new_feat[:B]
    hard_loss = jnp.sum(hl)

    # mirrors PyTorch return: (centroids, hardening_loss, new_adj, new_feat, points=h_prime)
    return params['centroids'], hard_loss, new_adj, new_feat, h_prime


if __name__ == "__main__":
    key = jax.random.PRNGKey(0)
    B, N = 2, 16                 # batch, max_nodes (= adj width)
    Fin = 16                     # args.input_dim
    hidden = 32                  # args.hidden_dim
    hid2 = hidden // 2
    pos = 8                      # args.positional_hiddim
    D = hid2 + pos
    num_centroids = (4, 2)       # args.num_centroids
    H = 2                        # args.cluster_heads
    total_centroids = sum(num_centroids)

    ks = jax.random.split(key, 10)
    params = {
        'w1t': (jax.random.normal(ks[0], (Fin, hidden)) * 0.1).astype(jnp.float32),
        'b1': (jax.random.normal(ks[1], (1, hidden)) * 0.01).astype(jnp.float32),
        'w2t': (jax.random.normal(ks[2], (hidden, hid2)) * 0.1).astype(jnp.float32),
        'b2': (jax.random.normal(ks[3], (1, hid2)) * 0.01).astype(jnp.float32),
        'wat': (jax.random.normal(ks[4], (N, pos)) * 0.1).astype(jnp.float32),
        'ba': (jax.random.normal(ks[5], (1, pos)) * 0.01).astype(jnp.float32),
        # centroids Parameter: 2*rand(H, (total_centroids-1)*D) - 1
        'centroids': (2.0 * jax.random.uniform(ks[6], (H, (total_centroids - 1) * D)) - 1.0
                      ).astype(jnp.float32),
    }

    x_node = jax.random.normal(ks[7], (B, N, Fin), dtype=jnp.float32)
    a = jax.random.uniform(ks[8], (B, N, N))
    adj = ((a + jnp.transpose(a, (0, 2, 1))) > 1.0).astype(jnp.float32)
    graph_sizes = jnp.array([12, 16], dtype=jnp.int32)

    fwd = jax.jit(functools.partial(gmn_forward, num_centroids=num_centroids,
                                    cluster_heads=H, pos_hiddim=pos, block_graphs=8))
    out = fwd(params, x_node, adj, graph_sizes)
    jax.block_until_ready(out)
    print("KERNEL_OK")
</pallas_src>

<mosaic_0001>
module attributes {stable_mosaic.version = 11 : i64} {
  func.func @gmn_kernel(%arg0: i32, %arg1: memref<2xi32, #tpu.memory_space<smem>>, %arg2: memref<2x16x16xf32, #tpu.memory_space<vmem>>, %arg3: memref<2x16x16xf32, #tpu.memory_space<vmem>>, %arg4: memref<16x32xf32, #tpu.memory_space<vmem>>, %arg5: memref<1x32xf32, #tpu.memory_space<vmem>>, %arg6: memref<32x16xf32, #tpu.memory_space<vmem>>, %arg7: memref<1x16xf32, #tpu.memory_space<vmem>>, %arg8: memref<16x8xf32, #tpu.memory_space<vmem>>, %arg9: memref<1x8xf32, #tpu.memory_space<vmem>>, %arg10: memref<8x26xf32, #tpu.memory_space<vmem>>, %arg11: memref<1x24x32xf32, #tpu.memory_space<vmem>>, %arg12: memref<1x4x32xf32, #tpu.memory_space<vmem>>, %arg13: memref<2x4x4xf32, #tpu.memory_space<vmem>>, %arg14: memref<2x4x24xf32, #tpu.memory_space<vmem>>, %arg15: memref<1x1x1xf32, #tpu.memory_space<vmem>>) attributes {dimension_semantics = [#tpu.dimension_semantics<parallel>], iteration_bounds = array<i64: 1>, scalar_prefetch = 1 : i64, scratch_operands = 0 : i64, tpu.core_type = #tpu.core_type<tc>, window_params = [{transform_indices = @transform_0, window_bounds = array<i64: 2, 16, 16>}, {transform_indices = @transform_1, window_bounds = array<i64: 2, 16, 16>}, {pipeline_mode = #tpu.pipeline_mode<synchronous>, transform_indices = @transform_2, window_bounds = array<i64: 16, 32>}, {pipeline_mode = #tpu.pipeline_mode<synchronous>, transform_indices = @transform_3, window_bounds = array<i64: 1, 32>}, {pipeline_mode = #tpu.pipeline_mode<synchronous>, transform_indices = @transform_4, window_bounds = array<i64: 32, 16>}, {pipeline_mode = #tpu.pipeline_mode<synchronous>, transform_indices = @transform_5, window_bounds = array<i64: 1, 16>}, {pipeline_mode = #tpu.pipeline_mode<synchronous>, transform_indices = @transform_6, window_bounds = array<i64: 16, 8>}, {pipeline_mode = #tpu.pipeline_mode<synchronous>, transform_indices = @transform_7, window_bounds = array<i64: 1, 8>}, {pipeline_mode = #tpu.pipeline_mode<synchronous>, transform_indices = @transform_8, window_bounds = array<i64: 8, 26>}, {transform_indices = @transform_9, window_bounds = array<i64: 1, 24, 32>}, {transform_indices = @transform_10, window_bounds = array<i64: 1, 4, 32>}, {transform_indices = @transform_11, window_bounds = array<i64: 2, 4, 4>}, {transform_indices = @transform_12, window_bounds = array<i64: 2, 4, 24>}, {transform_indices = @transform_13, window_bounds = array<i64: 1, 1, 1>}]} {
    %c0 = arith.constant 0 : index
    %c0_0 = arith.constant 0 : index
    %c0_1 = arith.constant 0 : index
    %0 = vector.load %arg2[%c0, %c0_0, %c0_1] : memref<2x16x16xf32, #tpu.memory_space<vmem>>, vector<2x16x16xf32>
    %1 = vector.shape_cast %0 : vector<2x16x16xf32> to vector<32x16xf32>
    %c0_2 = arith.constant 0 : index
    %c0_3 = arith.constant 0 : index
    %c0_4 = arith.constant 0 : index
    %2 = vector.load %arg3[%c0_2, %c0_3, %c0_4] : memref<2x16x16xf32, #tpu.memory_space<vmem>>, vector<2x16x16xf32>
    %3 = vector.shape_cast %2 : vector<2x16x16xf32> to vector<32x16xf32>
    %c0_5 = arith.constant 0 : index
    %c0_6 = arith.constant 0 : index
    %4 = vector.load %arg4[%c0_5, %c0_6] : memref<16x32xf32, #tpu.memory_space<vmem>>, vector<16x32xf32>
    %cst = arith.constant dense<0.000000e+00> : vector<32x32xf32>
    %5 = tpu.matmul %1, %4, %cst {dimension_numbers = #tpu.dot_dimension_numbers<[1], [0], [0], [1], [0, 0, 1, 1], [], []>} : vector<32x16xf32>, vector<16x32xf32>, vector<32x32xf32> -> vector<32x32xf32>
    %c0_7 = arith.constant 0 : index
    %c0_8 = arith.constant 0 : index
    %6 = vector.load %arg5[%c0_7, %c0_8] : memref<1x32xf32, #tpu.memory_space<vmem>>, vector<1x32xf32>
    %7 = vector.broadcast %6 : vector<1x32xf32> to vector<32x32xf32>
    %8 = arith.addf %5, %7 : vector<32x32xf32>
    %cst_9 = arith.constant 0.000000e+00 : f32
    %9 = vector.broadcast %cst_9 : f32 to vector<32x32xf32>
    %10 = arith.cmpf ogt, %8, %9 : vector<32x32xf32>
    %cst_10 = arith.constant 2.000000e-01 : f32
    %11 = vector.broadcast %cst_10 : f32 to vector<32x32xf32>
    %12 = arith.mulf %11, %8 : vector<32x32xf32>
    %13 = arith.select %10, %8, %12 : vector<32x32xi1>, vector<32x32xf32>
    %c0_11 = arith.constant 0 : index
    %c0_12 = arith.constant 0 : index
    %14 = vector.load %arg6[%c0_11, %c0_12] : memref<32x16xf32, #tpu.memory_space<vmem>>, vector<32x16xf32>
    %cst_13 = arith.constant dense<0.000000e+00> : vector<32x16xf32>
    %15 = tpu.matmul %13, %14, %cst_13 {dimension_numbers = #tpu.dot_dimension_numbers<[1], [0], [0], [1], [0, 0, 1, 1], [], []>} : vector<32x32xf32>, vector<32x16xf32>, vector<32x16xf32> -> vector<32x16xf32>
    %c0_14 = arith.constant 0 : index
    %c0_15 = arith.constant 0 : index
    %16 = vector.load %arg7[%c0_14, %c0_15] : memref<1x16xf32, #tpu.memory_space<vmem>>, vector<1x16xf32>
    %17 = vector.broadcast %16 : vector<1x16xf32> to vector<32x16xf32>
    %18 = arith.addf %15, %17 : vector<32x16xf32>
    %cst_16 = arith.constant 0.000000e+00 : f32
    %19 = vector.broadcast %cst_16 : f32 to vector<32x16xf32>
    %20 = arith.cmpf ogt, %18, %19 : vector<32x16xf32>
    %cst_17 = arith.constant 2.000000e-01 : f32
    %21 = vector.broadcast %cst_17 : f32 to vector<32x16xf32>
    %22 = arith.mulf %21, %18 : vector<32x16xf32>
    %23 = arith.select %20, %18, %22 : vector<32x16xi1>, vector<32x16xf32>
    %c0_18 = arith.constant 0 : index
    %c0_19 = arith.constant 0 : index
    %24 = vector.load %arg8[%c0_18, %c0_19] : memref<16x8xf32, #tpu.memory_space<vmem>>, vector<16x8xf32>
    %cst_20 = arith.constant dense<0.000000e+00> : vector<32x8xf32>
    %25 = tpu.matmul %3, %24, %cst_20 {dimension_numbers = #tpu.dot_dimension_numbers<[1], [0], [0], [1], [0, 0, 1, 1], [], []>} : vector<32x16xf32>, vector<16x8xf32>, vector<32x8xf32> -> vector<32x8xf32>
    %c0_21 = arith.constant 0 : index
    %c0_22 = arith.constant 0 : index
    %26 = vector.load %arg9[%c0_21, %c0_22] : memref<1x8xf32, #tpu.memory_space<vmem>>, vector<1x8xf32>
    %27 = vector.broadcast %26 : vector<1x8xf32> to vector<32x8xf32>
    %28 = arith.addf %25, %27 : vector<32x8xf32>
    %cst_23 = arith.constant 0.000000e+00 : f32
    %29 = vector.broadcast %cst_23 : f32 to vector<32x8xf32>
    %30 = arith.cmpf ogt, %28, %29 : vector<32x8xf32>
    %cst_24 = arith.constant 2.000000e-01 : f32
    %31 = vector.broadcast %cst_24 : f32 to vector<32x8xf32>
    %32 = arith.mulf %31, %28 : vector<32x8xf32>
    %33 = arith.select %30, %28, %32 : vector<32x8xi1>, vector<32x8xf32>
    %34 = tpu.concatenate %23, %33 in 1 : vector<32x16xf32>, vector<32x8xf32> -> vector<32x24xf32>
    %35 = tpu.transpose %34, [1, 0] : vector<32x24xf32> -> vector<24x32xf32>
    %c0_25 = arith.constant 0 : index
    %c0_26 = arith.constant 0 : index
    %c0_27 = arith.constant 0 : index
    %36 = vector.load %arg11[%c0_25, %c0_26, %c0_27] : memref<1x24x32xf32, #tpu.memory_space<vmem>>, vector<1x24x32xf32>
    %37 = vector.shape_cast %36 : vector<1x24x32xf32> to vector<24x32xf32>
    %38 = vector.shape_cast %35 : vector<24x32xf32> to vector<1x24x32xf32>
    tpu.vector_store %arg11[%c0_25, %c0_26, %c0_27], %38 {strides = array<i32>} : memref<1x24x32xf32, #tpu.memory_space<vmem>>, vector<1x24x32xf32>,
    %39 = tpu.iota {dimensions = array<i32: 1>} : vector<1x16xi32>
    %c2_i32 = arith.constant 2 : i32
    %40 = arith.muli %arg0, %c2_i32 : i32
    %c0_i32 = arith.constant 0 : i32
    %41 = arith.addi %40, %c0_i32 : i32
    %42 = arith.index_cast %41 : i32 to index
    %43 = memref.load %arg1[%42] : memref<2xi32, #tpu.memory_space<smem>>
    %44 = vector.broadcast %43 : i32 to vector<1x16xi32>
    %45 = arith.cmpi slt, %39, %44 : vector<1x16xi32>
    %46 = arith.extui %45 : vector<1x16xi1> to vector<1x16xi32>
    %47 = arith.sitofp %46 : vector<1x16xi32> to vector<1x16xf32>
    %c2_i32_28 = arith.constant 2 : i32
    %48 = arith.muli %arg0, %c2_i32_28 : i32
    %c1_i32 = arith.constant 1 : i32
    %49 = arith.addi %48, %c1_i32 : i32
    %50 = arith.index_cast %49 : i32 to index
    %51 = memref.load %arg1[%50] : memref<2xi32, #tpu.memory_space<smem>>
    %52 = vector.broadcast %51 : i32 to vector<1x16xi32>
    %53 = arith.cmpi slt, %39, %52 : vector<1x16xi32>
    %54 = arith.extui %53 : vector<1x16xi1> to vector<1x16xi32>
    %55 = arith.sitofp %54 : vector<1x16xi32> to vector<1x16xf32>
    %56 = tpu.concatenate %47, %55 in 1 : vector<1x16xf32>, vector<1x16xf32> -> vector<1x32xf32>
    %57 = vector.shape_cast %47 : vector<1x16xf32> to vector<1x1x16xf32>
    %58 = vector.shape_cast %55 : vector<1x16xf32> to vector<1x1x16xf32>
    %59 = tpu.concatenate %57, %58 in 0 : vector<1x1x16xf32>, vector<1x1x16xf32> -> vector<2x1x16xf32>
    %60 = arith.mulf %34, %34 : vector<32x24xf32>
    %cst_29 = arith.constant dense<0.000000e+00> : vector<32xf32>
    %61 = vector.multi_reduction <add>, %60, %cst_29 [1] : vector<32x24xf32> to vector<32xf32>
    %62 = vector.shape_cast %61 : vector<32xf32> to vector<32x1xf32>
    %cst_30 = arith.constant 1.000000e+00 : f32
    %63 = vector.broadcast %cst_30 : f32 to vector<32x1xf32>
    %64 = tpu.concatenate %34, %63, %62 in 1 : vector<32x24xf32>, vector<32x1xf32>, vector<32x1xf32> -> vector<32x26xf32>
    %c0_31 = arith.constant 0 : index
    %c0_32 = arith.constant 0 : index
    %65 = vector.load %arg10[%c0_31, %c0_32] : memref<8x26xf32, #tpu.memory_space<vmem>>, vector<8x26xf32>
    "tpu.trace_start"() <{level = 10 : i32, message = "kd,nd->kn"}> : () -> ()
    %cst_33 = arith.constant dense<0.000000e+00> : vector<8x32xf32>
    %66 = tpu.matmul %65, %64, %cst_33 {dimension_numbers = #tpu.dot_dimension_numbers<[1], [1], [0], [0], [0, 0, 1, 0], [], []>} : vector<8x26xf32>, vector<32x26xf32>, vector<8x32xf32> -> vector<8x32xf32>
    "tpu.trace_stop"() : () -> ()
    %67 = vector.broadcast %56 : vector<1x32xf32> to vector<8x32xf32>
    %68 = arith.mulf %66, %67 : vector<8x32xf32>
    %cst_34 = arith.constant 0.000000e+00 : f32
    %69 = vector.broadcast %cst_34 : f32 to vector<4x32xf32>
    %70 = vector.extract_strided_slice %68 {offsets = [0, 0], sizes = [4, 32], strides = [1, 1]} : vector<8x32xf32> to vector<4x32xf32>
    %cst_35 = arith.constant 1.000000e+00 : f32
    %71 = vector.broadcast %cst_35 : f32 to vector<4x32xf32>
    %72 = arith.addf %71, %70 : vector<4x32xf32>
    %73 = tpu.reciprocal %72 {approx = true} : vector<4x32xf32> -> vector<4x32xf32>
    %cst_36 = arith.constant dense<0.000000e+00> : vector<32xf32>
    %74 = vector.multi_reduction <add>, %73, %cst_36 [0] : vector<4x32xf32> to vector<32xf32>
    %75 = vector.shape_cast %74 : vector<32xf32> to vector<1x32xf32>
    %76 = vector.broadcast %75 : vector<1x32xf32> to vector<4x32xf32>
    %77 = arith.divf %73, %76 : vector<4x32xf32>
    %78 = arith.addf %69, %77 : vector<4x32xf32>
    %79 = vector.extract_strided_slice %68 {offsets = [4, 0], sizes = [4, 32], strides = [1, 1]} : vector<8x32xf32> to vector<4x32xf32>
    %cst_37 = arith.constant 1.000000e+00 : f32
    %80 = vector.broadcast %cst_37 : f32 to vector<4x32xf32>
    %81 = arith.addf %80, %79 : vector<4x32xf32>
    %82 = tpu.reciprocal %81 {approx = true} : vector<4x32xf32> -> vector<4x32xf32>
    %cst_38 = arith.constant dense<0.000000e+00> : vector<32xf32>
    %83 = vector.multi_reduction <add>, %82, %cst_38 [0] : vector<4x32xf32> to vector<32xf32>
    %84 = vector.shape_cast %83 : vector<32xf32> to vector<1x32xf32>
    %85 = vector.broadcast %84 : vector<1x32xf32> to vector<4x32xf32>
    %86 = arith.divf %82, %85 : vector<4x32xf32>
    %87 = arith.addf %78, %86 : vector<4x32xf32>
    %cst_39 = arith.constant 5.000000e-01 : f32
    %88 = vector.broadcast %cst_39 : f32 to vector<1x32xf32>
    %89 = arith.mulf %56, %88 : vector<1x32xf32>
    %90 = vector.broadcast %89 : vector<1x32xf32> to vector<4x32xf32>
    %91 = arith.mulf %87, %90 : vector<4x32xf32>
    %cst_40 = arith.constant dense<0xFF800000> : vector<32xf32>
    %92 = vector.multi_reduction <maximumf>, %91, %cst_40 [0] : vector<4x32xf32> to vector<32xf32>
    %93 = vector.shape_cast %92 : vector<32xf32> to vector<1x32xf32>
    %94 = vector.broadcast %93 : vector<1x32xf32> to vector<4x32xf32>
    %95 = arith.subf %91, %94 : vector<4x32xf32>
    %96 = math.exp %95 : vector<4x32xf32>
    %cst_41 = arith.constant dense<0.000000e+00> : vector<32xf32>
    %97 = vector.multi_reduction <add>, %96, %cst_41 [0] : vector<4x32xf32> to vector<32xf32>
    %98 = vector.shape_cast %97 : vector<32xf32> to vector<1x32xf32>
    %99 = vector.broadcast %98 : vector<1x32xf32> to vector<4x32xf32>
    %100 = arith.divf %96, %99 : vector<4x32xf32>
    %101 = vector.broadcast %56 : vector<1x32xf32> to vector<4x32xf32>
    %102 = arith.mulf %100, %101 : vector<4x32xf32>
    %c0_42 = arith.constant 0 : index
    %c0_43 = arith.constant 0 : index
    %c0_44 = arith.constant 0 : index
    %103 = vector.load %arg12[%c0_42, %c0_43, %c0_44] : memref<1x4x32xf32, #tpu.memory_space<vmem>>, vector<1x4x32xf32>
    %104 = vector.shape_cast %103 : vector<1x4x32xf32> to vector<4x32xf32>
    %105 = vector.shape_cast %102 : vector<4x32xf32> to vector<1x4x32xf32>
    tpu.vector_store %arg12[%c0_42, %c0_43, %c0_44], %105 {strides = array<i32>} : memref<1x4x32xf32, #tpu.memory_space<vmem>>, vector<1x4x32xf32>,
    %106 = vector.extract_strided_slice %102 {offsets = [0, 0], sizes = [4, 16], strides = [1, 1]} : vector<4x32xf32> to vector<4x16xf32>
    %107 = vector.extract_strided_slice %102 {offsets = [0, 16], sizes = [4, 16], strides = [1, 1]} : vector<4x32xf32> to vector<4x16xf32>
    %108 = vector.shape_cast %106 : vector<4x16xf32> to vector<1x4x16xf32>
    %109 = vector.shape_cast %107 : vector<4x16xf32> to vector<1x4x16xf32>
    %110 = tpu.concatenate %108, %109 in 0 : vector<1x4x16xf32>, vector<1x4x16xf32> -> vector<2x4x16xf32>
    %111 = vector.shape_cast %34 : vector<32x24xf32> to vector<2x16x24xf32>
    %112 = arith.mulf %110, %110 : vector<2x4x16xf32>
    %cst_45 = arith.constant dense<0.000000e+00> : vector<2x4xf32>
    %113 = vector.multi_reduction <add>, %110, %cst_45 [2] : vector<2x4x16xf32> to vector<2x4xf32>
    %114 = vector.shape_cast %113 : vector<2x4xf32> to vector<2x4x1xf32>
    %115 = vector.broadcast %114 : vector<2x4x1xf32> to vector<2x4x16xf32>
    %116 = arith.divf %112, %115 : vector<2x4x16xf32>
    %cst_46 = arith.constant dense<0.000000e+00> : vector<2x16xf32>
    %117 = vector.multi_reduction <add>, %116, %cst_46 [1] : vector<2x4x16xf32> to vector<2x16xf32>
    %118 = vector.shape_cast %117 : vector<2x16xf32> to vector<2x1x16xf32>
    %cst_47 = arith.constant 0.000000e+00 : f32
    %119 = vector.broadcast %cst_47 : f32 to vector<2x1x16xf32>
    %120 = arith.cmpf ogt, %59, %119 : vector<2x1x16xf32>
    %cst_48 = arith.constant 1.000000e+00 : f32
    %121 = vector.broadcast %cst_48 : f32 to vector<2x1x16xf32>
    %122 = arith.select %120, %118, %121 : vector<2x1x16xi1>, vector<2x1x16xf32>
    %123 = vector.broadcast %122 : vector<2x1x16xf32> to vector<2x4x16xf32>
    %124 = arith.divf %116, %123 : vector<2x4x16xf32>
    %cst_49 = arith.constant 1.000000e+00 : f32
    %125 = vector.broadcast %cst_49 : f32 to vector<2x4x16xf32>
    %126 = arith.addf %124, %125 : vector<2x4x16xf32>
    %127 = vector.broadcast %59 : vector<2x1x16xf32> to vector<2x4x16xf32>
    %128 = arith.subf %126, %127 : vector<2x4x16xf32>
    %cst_50 = arith.constant 1.000000e+00 : f32
    %129 = vector.broadcast %cst_50 : f32 to vector<2x4x16xf32>
    %130 = arith.addf %110, %129 : vector<2x4x16xf32>
    %131 = vector.broadcast %59 : vector<2x1x16xf32> to vector<2x4x16xf32>
    %132 = arith.subf %130, %131 : vector<2x4x16xf32>
    %cst_51 = arith.constant 0.000000e+00 : f32
    %133 = vector.broadcast %cst_51 : f32 to vector<2x1x16xf32>
    %134 = arith.cmpf ogt, %59, %133 : vector<2x1x16xf32>
    %135 = arith.divf %128, %132 : vector<2x4x16xf32>
    %136 = math.log %135 : vector<2x4x16xf32>
    %137 = arith.mulf %128, %136 : vector<2x4x16xf32>
    %cst_52 = arith.constant 0.000000e+00 : f32
    %138 = vector.shape_cast %134 : vector<2x1x16xi1> to vector<2x1x16xi1>
    %139 = vector.broadcast %138 : vector<2x1x16xi1> to vector<2x4x16xi1>
    %140 = vector.broadcast %cst_52 : f32 to vector<2x4x16xf32>
    %141 = arith.select %139, %137, %140 : vector<2x4x16xi1>, vector<2x4x16xf32>
    %142 = vector.shape_cast %141 : vector<2x4x16xf32> to vector<1x2x4x16xf32>
    %cst_53 = arith.constant dense<0.000000e+00> : vector<1xf32>
    %143 = vector.multi_reduction <add>, %142, %cst_53 [1, 2, 3] : vector<1x2x4x16xf32> to vector<1xf32>
    %144 = vector.shape_cast %143 : vector<1xf32> to vector<1x1x1x1xf32>
    %145 = vector.extract %144[0, 0, 0, 0] : f32 from vector<1x1x1x1xf32>
    %cst_54 = arith.constant 1.000000e+02 : f32
    %146 = arith.mulf %cst_54, %145 : f32
    %147 = vector.broadcast %146 : f32 to vector<1x1x1xf32>
    %c0_55 = arith.constant 0 : index
    %c0_56 = arith.constant 0 : index
    %c0_57 = arith.constant 0 : index
    %148 = vector.load %arg15[%c0_55, %c0_56, %c0_57] : memref<1x1x1xf32, #tpu.memory_space<vmem>>, vector<1x1x1xf32>
    tpu.vector_store %arg15[%c0_55, %c0_56, %c0_57], %147 {strides = array<i32>} : memref<1x1x1xf32, #tpu.memory_space<vmem>>, vector<1x1x1xf32>,
    "tpu.trace_start"() <{level = 10 : i32, message = "tkn,tnm->tkm"}> : () -> ()
    %cst_58 = arith.constant dense<0.000000e+00> : vector<2x4x16xf32>
    %149 = tpu.matmul %110, %2, %cst_58 {dimension_numbers = #tpu.dot_dimension_numbers<[2], [1], [1], [2], [0, 0, 0, 1, 1, 2], [0], [0]>} : vector<2x4x16xf32>, vector<2x16x16xf32>, vector<2x4x16xf32> -> vector<2x4x16xf32>
    "tpu.trace_stop"() : () -> ()
    "tpu.trace_start"() <{level = 10 : i32, message = "tkn,tjn->tkj"}> : () -> ()
    %cst_59 = arith.constant dense<0.000000e+00> : vector<2x4x4xf32>
    %150 = tpu.matmul %149, %110, %cst_59 {dimension_numbers = #tpu.dot_dimension_numbers<[2], [2], [1], [1], [0, 0, 0, 1, 1, 1], [0], [0]>} : vector<2x4x16xf32>, vector<2x4x16xf32>, vector<2x4x4xf32> -> vector<2x4x4xf32>
    "tpu.trace_stop"() : () -> ()
    %c0_60 = arith.constant 0 : index
    %c0_61 = arith.constant 0 : index
    %c0_62 = arith.constant 0 : index
    %151 = vector.load %arg13[%c0_60, %c0_61, %c0_62] : memref<2x4x4xf32, #tpu.memory_space<vmem>>, vector<2x4x4xf32>
    tpu.vector_store %arg13[%c0_60, %c0_61, %c0_62], %150 {strides = array<i32>} : memref<2x4x4xf32, #tpu.memory_space<vmem>>, vector<2x4x4xf32>,
    "tpu.trace_start"() <{level = 10 : i32, message = "tkn,tnd->tkd"}> : () -> ()
    %cst_63 = arith.constant dense<0.000000e+00> : vector<2x4x24xf32>
    %152 = tpu.matmul %110, %111, %cst_63 {dimension_numbers = #tpu.dot_dimension_numbers<[2], [1], [1], [2], [0, 0, 0, 1, 1, 2], [0], [0]>} : vector<2x4x16xf32>, vector<2x16x24xf32>, vector<2x4x24xf32> -> vector<2x4x24xf32>
    "tpu.trace_stop"() : () -> ()
    %c0_64 = arith.constant 0 : index
    %c0_65 = arith.constant 0 : index
    %c0_66 = arith.constant 0 : index
    %153 = vector.load %arg14[%c0_64, %c0_65, %c0_66] : memref<2x4x24xf32, #tpu.memory_space<vmem>>, vector<2x4x24xf32>
    tpu.vector_store %arg14[%c0_64, %c0_65, %c0_66], %152 {strides = array<i32>} : memref<2x4x24xf32, #tpu.memory_space<vmem>>, vector<2x4x24xf32>,
    return
  }
  func.func @transform_0(%arg0: i32, %arg1: memref<2xi32, #tpu.memory_space<smem>>) -> (i32, i32, i32) {
    %c0_i32 = arith.constant 0 : i32
    %c0_i32_0 = arith.constant 0 : i32
    %c0_i32_1 = arith.constant 0 : i32
    return %arg0, %c0_i32, %c0_i32_0 : i32, i32, i32
  }
  func.func @transform_1(%arg0: i32, %arg1: memref<2xi32, #tpu.memory_space<smem>>) -> (i32, i32, i32) {
    %c0_i32 = arith.constant 0 : i32
    %c0_i32_0 = arith.constant 0 : i32
    %c0_i32_1 = arith.constant 0 : i32
    return %arg0, %c0_i32, %c0_i32_0 : i32, i32, i32
  }
  func.func @transform_2(%arg0: i32, %arg1: memref<2xi32, #tpu.memory_space<smem>>) -> (i32, i32) {
    %c0_i32 = arith.constant 0 : i32
    %c0_i32_0 = arith.constant 0 : i32
    %c0_i32_1 = arith.constant 0 : i32
    return %c0_i32, %c0_i32_0 : i32, i32
  }
  func.func @transform_3(%arg0: i32, %arg1: memref<2xi32, #tpu.memory_space<smem>>) -> (i32, i32) {
    %c0_i32 = arith.constant 0 : i32
    %c0_i32_0 = arith.constant 0 : i32
    %c0_i32_1 = arith.constant 0 : i32
    return %c0_i32, %c0_i32_0 : i32, i32
  }
  func.func @transform_4(%arg0: i32, %arg1: memref<2xi32, #tpu.memory_space<smem>>) -> (i32, i32) {
    %c0_i32 = arith.constant 0 : i32
    %c0_i32_0 = arith.constant 0 : i32
    %c0_i32_1 = arith.constant 0 : i32
    return %c0_i32, %c0_i32_0 : i32, i32
  }
  func.func @transform_5(%arg0: i32, %arg1: memref<2xi32, #tpu.memory_space<smem>>) -> (i32, i32) {
    %c0_i32 = arith.constant 0 : i32
    %c0_i32_0 = arith.constant 0 : i32
    %c0_i32_1 = arith.constant 0 : i32
    return %c0_i32, %c0_i32_0 : i32, i32
  }
  func.func @transform_6(%arg0: i32, %arg1: memref<2xi32, #tpu.memory_space<smem>>) -> (i32, i32) {
    %c0_i32 = arith.constant 0 : i32
    %c0_i32_0 = arith.constant 0 : i32
    %c0_i32_1 = arith.constant 0 : i32
    return %c0_i32, %c0_i32_0 : i32, i32
  }
  func.func @transform_7(%arg0: i32, %arg1: memref<2xi32, #tpu.memory_space<smem>>) -> (i32, i32) {
    %c0_i32 = arith.constant 0 : i32
    %c0_i32_0 = arith.constant 0 : i32
    %c0_i32_1 = arith.constant 0 : i32
    return %c0_i32, %c0_i32_0 : i32, i32
  }
  func.func @transform_8(%arg0: i32, %arg1: memref<2xi32, #tpu.memory_space<smem>>) -> (i32, i32) {
    %c0_i32 = arith.constant 0 : i32
    %c0_i32_0 = arith.constant 0 : i32
    %c0_i32_1 = arith.constant 0 : i32
    return %c0_i32, %c0_i32_0 : i32, i32
  }
  func.func @transform_9(%arg0: i32, %arg1: memref<2xi32, #tpu.memory_space<smem>>) -> (i32, i32, i32) {
    %c0_i32 = arith.constant 0 : i32
    %c0_i32_0 = arith.constant 0 : i32
    %c0_i32_1 = arith.constant 0 : i32
    return %arg0, %c0_i32, %c0_i32_0 : i32, i32, i32
  }
  func.func @transform_10(%arg0: i32, %arg1: memref<2xi32, #tpu.memory_space<smem>>) -> (i32, i32, i32) {
    %c0_i32 = arith.constant 0 : i32
    %c0_i32_0 = arith.constant 0 : i32
    %c0_i32_1 = arith.constant 0 : i32
    return %arg0, %c0_i32, %c0_i32_0 : i32, i32, i32
  }
  func.func @transform_11(%arg0: i32, %arg1: memref<2xi32, #tpu.memory_space<smem>>) -> (i32, i32, i32) {
    %c0_i32 = arith.constant 0 : i32
    %c0_i32_0 = arith.constant 0 : i32
    %c0_i32_1 = arith.constant 0 : i32
    return %arg0, %c0_i32, %c0_i32_0 : i32, i32, i32
  }
  func.func @transform_12(%arg0: i32, %arg1: memref<2xi32, #tpu.memory_space<smem>>) -> (i32, i32, i32) {
    %c0_i32 = arith.constant 0 : i32
    %c0_i32_0 = arith.constant 0 : i32
    %c0_i32_1 = arith.constant 0 : i32
    return %arg0, %c0_i32, %c0_i32_0 : i32, i32, i32
  }
  func.func @transform_13(%arg0: i32, %arg1: memref<2xi32, #tpu.memory_space<smem>>) -> (i32, i32, i32) {
    %c0_i32 = arith.constant 0 : i32
    %c0_i32_0 = arith.constant 0 : i32
    %c0_i32_1 = arith.constant 0 : i32
    return %arg0, %c0_i32, %c0_i32_0 : i32, i32, i32
  }
}

</mosaic_0001>

<bundles_post_ra>
// kernel: gmn_forward.1
= control target key start
LH: loop header
LB: loop body
LE: loop exit
PB: predicated region body
PF: predicated region fallthrough
CT: control target
= control target key end

     0   :  { %s1985_s0 = inlined_call_operand.vmem [shape: s32[2], index: 0, kind: input, shape index: {}]   ;;  %s1986_s1 = inlined_call_operand.vmem [shape: f32[2,16,16], index: 1, kind: input, shape index: {}]   ;;  %s1987_s2 = inlined_call_operand.vmem [shape: f32[2,16,16], index: 2, kind: input, shape index: {}]   ;;  %s1988_s3 = inlined_call_operand.vmem [shape: f32[16,32], index: 3, kind: input, shape index: {}]   ;;  %s1989_s4 = inlined_call_operand.vmem [shape: f32[1,32], index: 4, kind: input, shape index: {}]   ;;  %s1990_s5 = inlined_call_operand.vmem [shape: f32[32,16], index: 5, kind: input, shape index: {}]   ;;  %s1991_s6 = inlined_call_operand.vmem [shape: f32[1,16], index: 6, kind: input, shape index: {}]   ;;  %s1992_s7 = inlined_call_operand.vmem [shape: f32[16,8], index: 7, kind: input, shape index: {}]   ;;  %s1993_s8 = inlined_call_operand.vmem [shape: f32[1,8], index: 8, kind: input, shape index: {}]   ;;  %s1994_s9 = inlined_call_operand.vmem [shape: f32[8,26], index: 9, kind: input, shape index: {}]   ;;  %s1995_s10 = inlined_call_operand.vmem [shape: f32[1,24,32], index: 10, kind: output, shape index: {0}]   ;;  %s1996_s11 = inlined_call_operand.hbm [shape: f32[1,4,32], index: 11, kind: output, shape index: {1}]   ;;  %s1997_s12 = inlined_call_operand.hbm [shape: f32[2,4,4], index: 12, kind: output, shape index: {2}]   ;;  %s1998_s13 = inlined_call_operand.hbm [shape: f32[2,4,24], index: 13, kind: output, shape index: {3}]   ;;  %s1999_s14 = inlined_call_operand.hbm [shape: f32[1,1,1], index: 14, kind: output, shape index: {4}]  }
   0x1   :  { %s20_s15 = sshll.u32 %s1985_s0, 4  ;;  %s21_s15 = int_to_ptr.vmem [resolvable:$true] %s20_s15 }
   0x2   :  { %s1495_s16 = scalar_lea.vmem %s21_s15, 16  ;;  %p1500_p1 = scmp.lt.s32.totalorder %s21_s15, %s21_s15 }
   0x3   :  { %p1496_p0 = scmp.ne.s32.totalorder %s21_s15, %s1495_s16  ;;  %p1501_p2 = scmp.lt.s32.totalorder %s1495_s16, %s1495_s16 }
   0x5   :  { %p1502_p3 = por %p1501_p2, %p1500_p1 }
   0x7   :  { %p1503_p4 = pnand %p1502_p3, %p1496_p0 }
   0x9   :  { %1506 = shalt.err (!%p1503_p4)  }
   0xa   :  { %s1603_s17 = smov [#allocation3]  }
   0xb   :  { %23 = dma.vmem_to_smem %s21_s15, 16, %s1603_s17, [#allocation2] }
   0xc   :  { %1595 = dma.done.wait [#allocation2], 16 }
   0xd   :  { %1596 = vsyncadd [#allocation2], 4294967280 }
   0xe   :  { %25 = sfence }
   0xf   :  { %26 = vsyncpa [#allocation5], 0 }
  0x10   :  { %27 = vsyncpa [#allocation7], 0  ;;  %v55_v0 = vld [vmem:[%s1988_s3] sm:$0xff]  ;;  %v56_v1 = vld [vmem:[%s1988_s3 + $0x8] sm:$0xff]  ;;  %vm64_vm0 = vcmask 130048  }
  0x11   :  { %v47_v2 = vld [vmem:[%s1986_s1] sm:$0xff]  ;;  %v1418_v3 = vpack.c.bf16 %v56_v1, %v55_v0  ;;  %v296_v5 = vld [vmem:[%s1992_s7 + $0x8] sm:$0xff]  ;;  %v1723_v9 = vld [vmem:[%s1987_s2 + $0x10] sm:$0xff] }
  0x12   :  { %1339 = vmatprep.mubr.msk.f32.mxu0 %vm64_vm0, %v47_v2  ;;  %v295_v4 = vld [vmem:[%s1992_s7] sm:$0xff]  ;;  %v1718_v8 = vld [vmem:[%s1987_s2 + $0x8] sm:$0xff]  ;;  %v1728_v10 = vld [vmem:[%s1987_s2 + $0x18] sm:$0xff] }
  0x13   :  { %v1713_v6 = vld [vmem:[%s1987_s2] sm:$0xff]  ;;  %1419 = vmatprep.subr.bf16.mxu0 %v1418_v3  ;;  %v1430_v7 = vpack.c.bf16 %v296_v5, %v295_v4  ;;  %v48_v11 = vld [vmem:[%s1986_s1 + $0x8] sm:$0xff]  ;;  %v1446_v13 = vpack.c.bf16 %v1728_v10, %v1723_v9 }
  0x14   :  { %1421 = vmatpush3.bf16.msra.mxu0 %v1418_v3  ;;  %v1443_v12 = vpack.c.bf16 %v1718_v8, %v1713_v6 }
  0x15   :  { %28 = vsyncpa [#allocation10], 0  ;;  %v49_v14 = vld [vmem:[%s1986_s1 + $0x10] sm:$0xff]  ;;  %1431 = vmatprep.subr.bf16.mxu0 %v1430_v7  ;;  %v50_v15 = vld [vmem:[%s1986_s1 + $0x18] sm:$0xff]  ;;  %vm185_vm3 = vcmask 261120   ;;  %vm491_vm14 = vcmask 195584  }
  0x16   :  { %v174_v16 = vld [vmem:[%s1990_s5] sm:$0xff]  ;;  %v175_v17 = vld [vmem:[%s1990_s5 + $0x8] sm:$0xff]  ;;  %v176_v19 = vld [vmem:[%s1990_s5 + $0x10] sm:$0xff]  ;;  %vm1606_vm15 = vmmov 0   ;;  %s471_s17 = sld [smem:[#allocation3]]  ;;  %s1610_s21 = smov [#allocation4]  }
  0x17   :  { %1340 = vmatmul.mubr.msk.f32.vlgmr.msra.gmra.mrb[0].mxu0 %vm64_vm0, %v48_v11  ;;  %v1422_v18 = vpack.c.bf16 %v175_v17, %v174_v16  ;;  %v177_v20 = vld [vmem:[%s1990_s5 + $0x18] sm:$0xff]  ;;  %v1263_v22 = vld [vmem:[%s1989_s4] ss:$0 sm:$0xff]  ;;  %s1208_s22 = sshll.u32 %s1610_s21, 4  ;;  %s1209_s22 = int_to_ptr.vmem [resolvable:$true] %s1208_s22 }
  0x18   :  { %1342 = vmatprep.mubr.msk.f32.mxu0 %vm64_vm0, %v49_v14  ;;  %1433 = vmatpush3.bf16.msra.mxu0 %v1430_v7  ;;  %v1426_v21 = vpack.c.bf16 %v177_v20, %v176_v19  ;;  %v1273_v36 = vld [vmem:[%s1993_s8] ss:$0 sm:$0xff]  ;;  %s1604_s8 = smov 16   ;;  %s1507_s1 = scalar_lea.vmem %s1209_s22, 64 }
  0x19   :  { %1423 = vmatprep.subr.bf16.mxu1 %v1422_v18  ;;  %v1268_v56 = vld [vmem:[%s1991_s6] ss:$0 sm:$0xff]  ;;  %s1279_s6 = sld [smem:[#allocation3 + $0x1]]  ;;  %p1508_p5 = scmp.ne.s32.totalorder %s1209_s22, %s1507_s1 }
  0x1a   :  { %1425 = vmatpush3.bf16.msra.mxu1 %v1422_v18  ;;  %p1512_p6 = scmp.lt.s32.totalorder %s1209_s22, %s1209_s22  ;;  %p1513_p7 = scmp.lt.s32.totalorder %s1507_s1, %s1507_s1 }
  0x1b   :  { %1343 = vmatmul.mubr.msk.f32.gmra.mrb[2].mxu0 %vm64_vm0, %v50_v15  ;;  %1427 = vmatprep.subr.bf16.mxu1 %v1426_v21 }
  0x1c   :  { %1363 = vmatprep.mubr.msk.f32.mxu0 %vm64_vm0, %v1713_v6  ;;  %p1514_p8 = por %p1513_p7, %p1512_p6 }
  0x1e   :  { %1429 = vmatpush3.bf16.msra.mxu1 %v1426_v21  ;;  %p1515_p9 = pnand %p1514_p8, %p1508_p5 }
  0x1f   :  { %1364 = vmatmul.mubr.msk.f32.vlgmr.msra.gmra.mrb[4].mxu0 %vm64_vm0, %v1718_v8 }
  0x20   :  { %1366 = vmatprep.mubr.msk.f32.mxu0 %vm64_vm0, %v1723_v9 }
  0x23   :  { %1367 = vmatmul.mubr.msk.f32.gmra.mrb[6].mxu0 %vm64_vm0, %v1728_v10 }
  0xea   :  { %v1341_v23 = vpop.f32.mrb[0].mxu0 }
  0xeb   :  { %v149_v24 = vadd.f32 %v1341_v23, %v1263_v22  ;;  %v143_v25 = vpop.f32.mrb[1].mxu0 }
  0xec   :  { %v144_v26 = vadd.f32 %v1263_v22, %v143_v25 }
  0xed   :  { %v167_v27 = vmul.f32 0.2, %v149_v24  ;;  %vm163_vm1 = vcmp.gt.f32.partialorder %v149_v24, 0.0 }
  0xee   :  { %v1344_v28 = vpop.f32.mrb[2].mxu0  ;;  %vm162_vm2 = vcmp.gt.f32.partialorder %v144_v26, 0.0  ;;  %v166_v29 = vmul.f32 0.2, %v144_v26 }
  0xef   :  { %v159_v30 = vadd.f32 %v1344_v28, %v1263_v22  ;;  %v153_v31 = vpop.f32.mrb[3].mxu0  ;;  %v171_v35 = vsel %vm163_vm1, %v149_v24, %v167_v27 }
  0xf0   :  { %v154_v32 = vadd.f32 %v1263_v22, %v153_v31  ;;  %v170_v33 = vsel %vm162_vm2, %v144_v26, %v166_v29  ;;  %v1605_v31 = vmov 0.0|0.0   ;;  %vm508_vm2 = vcmask 203776  }
  0xf1   :  { %v169_v34 = vmul.f32 0.2, %v159_v30  ;;  %1353 = vmatprep.mubr.msk.f32.mxu1 %vm185_vm3, %v170_v33  ;;  %vm165_vm4 = vcmp.gt.f32.partialorder %v159_v30, 0.0  ;;  %1434 = vmatprep.subr.bf16.mxu1 %v1605_v31  ;;  %v468_v33 = vlaneseq }
  0xf2   :  { %vm164_vm5 = vcmp.gt.f32.partialorder %v154_v32, 0.0  ;;  %v168_v37 = vmul.f32 0.2, %v154_v32  ;;  %1354 = vmatmul.mubr.msk.f32.vlgmr.msra.gmra.mrb[0].mxu1 %vm185_vm3, %v171_v35  ;;  %v1365_v38 = vpop.f32.mrb[4].mxu0  ;;  %1442 = vmatprep.subr.bf16.mxu0 %v1605_v31  ;;  %v478_v35 = vstv %s1279_s6 }
  0xf3   :  { %v388_v39 = vadd.f32 %v1365_v38, %v1273_v36  ;;  %v382_v40 = vpop.f32.mrb[5].mxu0  ;;  %v173_v43 = vsel %vm165_vm4, %v159_v30, %v169_v34  ;;  %1444 = vmatpush3.bf16.msra.mxu0 %v1443_v12  ;;  %v469_v34 = vand.u32 127, %v468_v33  ;;  %vm514_vm4 = vcmask 211968  }
  0xf4   :  { %v172_v41 = vsel %vm164_vm5, %v154_v32, %v168_v37  ;;  %v383_v42 = vadd.f32 %v1273_v36, %v382_v40  ;;  %1445 = vmatprep.subr.bf16.mxu0 %v1605_v31  ;;  %v1607_v32 = vmov 0.0   ;;  %vm1436_vm5 = vmpackc.low %vm514_vm4, %vm514_vm4 }
  0xf5   :  { %1356 = vmatprep.mubr.msk.f32.mxu1 %vm185_vm3, %v172_v41  ;;  %v406_v44 = vmul.f32 0.2, %v388_v39  ;;  %vm402_vm7 = vcmp.gt.f32.partialorder %v388_v39, 0.0  ;;  %1384 = vmatprep.mubr.msk.f32.mxu0 %vm1606_vm15, %v1607_v32  ;;  %vm479_vm1 = vcmp.lt.s32.totalorder %v469_v34, %v478_v35 }
  0xf6   :  { %1357 = vmatmul.mubr.msk.f32.gmra.mrb[2].mxu1 %vm185_vm3, %v173_v43  ;;  %vm401_vm6 = vcmp.gt.f32.partialorder %v383_v42, 0.0  ;;  %v405_v45 = vmul.f32 0.2, %v383_v42  ;;  %v1368_v46 = vpop.f32.mrb[6].mxu0 }
  0xf7   :  { %v398_v47 = vadd.f32 %v1368_v46, %v1273_v36  ;;  %v392_v48 = vpop.f32.mrb[7].mxu0  ;;  %v410_v52 = vsel %vm402_vm7, %v388_v39, %v406_v44  ;;  %1377 = vmatprep.mubr.msk.f32.mxu1 %vm1606_vm15, %v1607_v32  ;;  %vm607_vm7 = vcmask 257024  }
  0xf8   :  { %v409_v49 = vsel %vm401_vm6, %v383_v42, %v405_v45  ;;  %v393_v50 = vadd.f32 %v1273_v36, %v392_v48  ;;  %v1818_v36 = vsel %vm479_vm1, 1.0, %v1607_v32  ;;  %v513_v48 = vld [vmem:[%s1994_s9] sm:$0xff]  ;;  %s1608_s9 = smov 112  }
  0xf9   :  { %417 = vrot.lane.b32.xlu0 %v409_v49, %s1604_s8  ;;  %v408_v51 = vmul.f32 0.2, %v398_v47  ;;  %vm404_vm9 = vcmp.gt.f32.partialorder %v398_v47, 0.0  ;;  %v472_v49 = vstv %s471_s17 }
  0xfa   :  { %vm403_vm8 = vcmp.gt.f32.partialorder %v393_v50, 0.0  ;;  %v407_v53 = vmul.f32 0.2, %v393_v50  ;;  %vm473_vm6 = vcmp.lt.s32.totalorder %v469_v34, %v472_v49 }
  0xfb   :  { %v412_v55 = vsel %vm404_vm9, %v398_v47, %v408_v51  ;;  %v1845_v51 = vsel %vm473_vm6, 1.0, %v1607_v32 }
  0xfc   :  { %v411_v54 = vsel %vm403_vm8, %v393_v50, %v407_v53  ;;  %v601_v50 = vshrl.u32 %v468_v33, 7  ;;  %vm667_vm8 = vcmask 125952   ;;  %vm692_vm9 = vcmp.gt.f32.partialorder %v1845_v51, 0.0 }
  0xfd   :  { %419 = vrot.lane.b32.xlu0 %v410_v52, %s1604_s8  ;;  %421 = vrot.lane.b32.xlu1 %v411_v54, %s1604_s8 }
  0xfe   :  { %v1847_v53 = vsub.s32 0, %v601_v50 }
 0x101   :  { %423 = vrot.lane.b32.xlu1 %v412_v55, %s1604_s8 }
 0x16b   :  { %v418_v57 = vpop.permute.xlu0 %417 }
 0x16f   :  { %v422_v0 = vpop.permute.xlu1 %421  ;;  %v420_v2 = vpop.permute.xlu0 %419 }
 0x173   :  { %v424_v23 = vpop.permute.xlu1 %423 }
 0x1c5   :  { %v1355_v58 = vpop.f32.mrb[0].mxu1 }
 0x1c6   :  { %v270_v59 = vadd.f32 %v1355_v58, %v1268_v56  ;;  %v264_v60 = vpop.f32.mrb[1].mxu1 }
 0x1c7   :  { %v265_v61 = vadd.f32 %v1268_v56, %v264_v60 }
 0x1c8   :  { %vm284_vm10 = vcmp.gt.f32.partialorder %v270_v59, 0.0  ;;  %v288_v62 = vmul.f32 0.2, %v270_v59 }
 0x1c9   :  { %vm283_vm11 = vcmp.gt.f32.partialorder %v265_v61, 0.0  ;;  %v287_v63 = vmul.f32 0.2, %v265_v61  ;;  %v1358_v1 = vpop.f32.mrb[2].mxu1 }
 0x1ca   :  { %v292_v3 = vsel %vm284_vm10, %v270_v59, %v288_v62  ;;  %v280_v4 = vadd.f32 %v1358_v1, %v1268_v56  ;;  %v274_v5 = vpop.f32.mrb[3].mxu1  ;;  %vm693_vm10 = vcmp.gt.f32.partialorder %v1818_v36, 0.0 }
 0x1cb   :  { %v291_v7 = vsel %vm283_vm11, %v265_v61, %v287_v63  ;;  %v275_v11 = vadd.f32 %v1268_v56, %v274_v5  ;;  %v1784_v14 = vsel %vm64_vm0, %v292_v3, %v420_v2 }
 0x1cc   :  { %vm286_vm12 = vcmp.gt.f32.partialorder %v280_v4, 0.0  ;;  %v290_v15 = vmul.f32 0.2, %v280_v4  ;;  %v488_v16 = vmul.f32 %v1784_v14, %v1784_v14  ;;  %v1789_v17 = vsel %vm64_vm0, %v291_v7, %v418_v57 }
 0x1cd   :  { %vm285_vm13 = vcmp.gt.f32.partialorder %v275_v11, 0.0  ;;  %v289_v18 = vmul.f32 0.2, %v275_v11  ;;  %v487_v19 = vmul.f32 %v1789_v17, %v1789_v17  ;;  %v505_v6 = vsel %vm491_vm14, %v1784_v14, 1.0 }
 0x1ce   :  { %v294_v20 = vsel %vm286_vm12, %v280_v4, %v290_v15  ;;  %v495_v21 = vsel %vm491_vm14, %v488_v16, 0.0  ;;  %v504_v37 = vsel %vm491_vm14, %v1789_v17, 1.0  ;;  %v1449_v10 = vpack.c.bf16 %v1784_v14, %v1789_v17 }
 0x1cf   :  { %v293_v22 = vsel %vm285_vm13, %v275_v11, %v289_v18  ;;  %496 = vadd.xlane.f32.xlu1 %v495_v21  ;;  %v492_v24 = vsel %vm491_vm14, %v487_v19, 0.0  ;;  %v1799_v26 = vsel %vm64_vm0, %v294_v20, %v424_v23 }
 0x1d0   :  { %v1796_v25 = vsel %vm64_vm0, %v293_v22, %v422_v0  ;;  %493 = vadd.xlane.f32.xlu0 %v492_v24  ;;  %v490_v29 = vmul.f32 %v1799_v26, %v1799_v26  ;;  %v507_v43 = vsel %vm491_vm14, %v1799_v26, 1.0 }
 0x1d1   :  { %v489_v27 = vmul.f32 %v1796_v25, %v1796_v25  ;;  %v506_v42 = vsel %vm491_vm14, %v1796_v25, 1.0 }
 0x1d2   :  { %v501_v30 = vsel %vm491_vm14, %v490_v29, 0.0 }
 0x1d3   :  { %v498_v28 = vsel %vm491_vm14, %v489_v27, 0.0 }
 0x1d4   :  { %499 = vadd.xlane.f32.xlu0 %v498_v28 }
 0x1d8   :  { %502 = vadd.xlane.f32.xlu0 %v501_v30 }
 0x1e0   :  { %483 = vrot.lane.b32.xlu1 %v1818_v36, %s1604_s8 }
 0x25c   :  { %v497_v8 = vpop.xlane.xlu1 %496 }
 0x25d   :  { %v510_v12 = vsel %vm508_vm2, %v505_v6, %v497_v8  ;;  %v494_v38 = vpop.xlane.xlu0 %493 }
 0x25e   :  { %v509_v39 = vsel %vm508_vm2, %v504_v37, %v494_v38 }
 0x25f   :  { %v1435_v40 = vpack.c.bf16 %v510_v12, %v509_v39 }
 0x260   :  { %v484_v52 = vpop.permute.xlu1 %483 }
 0x261   :  { %1437 = vmatpush3.bf16.xpose.msk.msra.mxu1 %vm1436_vm5, %v1435_v40  ;;  %v500_v41 = vpop.xlane.xlu0 %499  ;;  %v486_v54 = vsel %vm64_vm0, %v1845_v51, %v484_v52 }
 0x262   :  { %1438 = vmatprep.subr.bf16.mxu1 %v1605_v31  ;;  %v511_v45 = vsel %vm508_vm2, %v506_v42, %v500_v41  ;;  %v603_v55 = vrot.slane %v486_v54, %v1847_v53  ;;  %v634_v22 = vmul.f32 0.5, %v486_v54 }
 0x264   :  { %v638_v28 = vrot.slane %v634_v22, %v1847_v53 }
 0x265   :  { %v503_v44 = vpop.xlane.xlu0 %502 }
 0x266   :  { %v512_v46 = vsel %vm508_vm2, %v507_v43, %v503_v44 }
 0x267   :  { %v1439_v47 = vpack.c.bf16 %v512_v46, %v511_v45 }
 0x269   :  { %1441 = vmatpush3.bf16.xpose.msk.msra.mxu1 %vm1436_vm5, %v1439_v47 }
 0x26a   :  { %1399 = vmatprep.subr.mxu1 %v1607_v32 }
 0x270   :  { %1378 = vmatmul.mubr.msk.f32.vlgmr.msra.gmra.mrb[4].mxu1 %vm514_vm4, %v513_v48 }
 0x271   :  { %1401 = vmatprep.mubr.msk.f32.mxu1 %vm1606_vm15, %v1607_v32 }
 0x343   :  { %v596_v56 = vpop.f32.mrb[4].mxu1 }
 0x344   :  { %v604_v57 = vmul.f32 %v603_v55, %v596_v56  ;;  %v1379_v58 = vpop.f32.mrb[5].mxu1 }
 0x346   :  { %v605_v59 = vadd.f32 1.0, %v604_v57 }
 0x348   :  { %1469 = vrcp.f32 %v605_v59 }
 0x352   :  { %v1470_v60 = vpop.eup %1469 }
 0x353   :  { %v608_v61 = vsel %vm607_vm7, %v1470_v60, 0.0  ;;  %v619_v62 = vrot.slane %v1470_v60, 4 }
 0x354   :  { %v609_v63 = vrot.slane %v608_v61, 4 }
 0x355   :  { %v621_v0 = vsel %vm607_vm7, %v619_v62, 0.0 }
 0x356   :  { %v610_v1 = vadd.f32 %v609_v63, %v608_v61  ;;  %v622_v2 = vrot.slane %v621_v0, 4 }
 0x358   :  { %v611_v3 = vrot.slane %v610_v1, 2  ;;  %v623_v4 = vadd.f32 %v622_v2, %v621_v0 }
 0x35a   :  { %v612_v5 = vadd.f32 %v611_v3, %v610_v1  ;;  %v624_v7 = vrot.slane %v623_v4, 2 }
 0x35c   :  { %v613_v11 = vrot.slane %v612_v5, 1  ;;  %v625_v15 = vadd.f32 %v624_v7, %v623_v4 }
 0x35e   :  { %v614_v16 = vadd.f32 %v613_v11, %v612_v5  ;;  %v626_v18 = vrot.slane %v625_v15, 1 }
 0x360   :  { %v627_v19 = vadd.f32 %v626_v18, %v625_v15  ;;  %1471 = vrcp.f32 %v614_v16  ;;  %v713_v16 = vrot.slane %v1845_v51, %v1847_v53 }
 0x362   :  { %1473 = vrcp.f32 %v627_v19 }
 0x36a   :  { %v1472_v20 = vpop.eup %1471 }
 0x36b   :  { %v616_v24 = vmul.f32 %v1472_v20, %v1470_v60 }
 0x36c   :  { %v1474_v21 = vpop.eup %1473 }
 0x36d   :  { %v629_v23 = vmul.f32 %v1474_v21, %v1470_v60 }
 0x36f   :  { %v631_v27 = vrot.slane %v629_v23, 4 }
 0x371   :  { %v633_v29 = vadd.f32 %v631_v27, %v616_v24 }
 0x373   :  { %v639_v30 = vmul.f32 %v638_v28, %v633_v29  ;;  %v717_v29 = vrot.slane %v1818_v36, %v1847_v53  ;;  %v1452_v36 = vpack.c.bf16 %v1799_v26, %v1796_v25 }
 0x375   :  { %v640_v33 = vsel %vm607_vm7, %v639_v30, -inf }
 0x376   :  { %v641_v34 = vrot.slane %v640_v33, 4 }
 0x378   :  { %v642_v35 = vmax.f32 %v640_v33, %v641_v34 }
 0x37a   :  { %v643_v6 = vrot.slane %v642_v35, 2 }
 0x37c   :  { %v644_v8 = vmax.f32 %v642_v35, %v643_v6 }
 0x37e   :  { %v645_v12 = vrot.slane %v644_v8, 1 }
 0x380   :  { %v646_v37 = vmax.f32 %v644_v8, %v645_v12 }
 0x382   :  { %v647_v38 = vsub.f32 %v639_v30, %v646_v37 }
 0x384   :  { %v648_v39 = vmul.f32 1.442695, %v647_v38 }
 0x386   :  { %1475 = vpow2.f32 %v648_v39 }
 0x390   :  { %v1476_v40 = vpop.eup %1475 }
 0x391   :  { %v650_v41 = vsel %vm607_vm7, %v1476_v40, 0.0 }
 0x392   :  { %v651_v42 = vrot.slane %v650_v41, 4 }
 0x394   :  { %v652_v43 = vadd.f32 %v651_v42, %v650_v41 }
 0x396   :  { %v653_v44 = vrot.slane %v652_v43, 2 }
 0x398   :  { %v654_v45 = vadd.f32 %v653_v44, %v652_v43  ;;  %v1609_v44 = vmov 0  }
 0x39a   :  { %v655_v46 = vrot.slane %v654_v45, 1 }
 0x39c   :  { %v656_v47 = vadd.f32 %v655_v46, %v654_v45  ;;  %v734_v45 = vsel %vm692_vm9, 1, %v1609_v44  ;;  %v735_v46 = vsel %vm693_vm10, 1, %v1609_v44 }
 0x39e   :  { %1477 = vrcp.f32 %v656_v47 }
 0x3a8   :  { %v1478_v48 = vpop.eup %1477 }
 0x3a9   :  { %v658_v49 = vmul.f32 %v1478_v48, %v1476_v40  ;;  %v739_v48 = vrot.slane %v734_v45, %v1847_v53 }
 0x3ab   :  { %v659_v50 = vmul.f32 %v658_v49, %v603_v55  ;;  %v743_v49 = vrot.slane %v735_v46, %v1847_v53  ;;  %vm744_vm11 = vcmp.eq.s32.totalorder %v739_v48, 1 }
 0x3ad   :  { %660 = vst.msk [vmem:[#allocation4] sm:$0xf] %vm607_vm7, %v659_v50  ;;  %662 = vrot.lane.b32.xlu0 %v659_v50, %s1608_s9  ;;  %1385 = vmatmul.mubr.msk.f32.vlgmr.msra.gmra.mrb[8].mxu0 %vm64_vm0, %v659_v50  ;;  %v668_v52 = vsel %vm667_vm8, %v659_v50, 0.0  ;;  %v665_v57 = vmul.f32 %v659_v50, %v659_v50  ;;  %v720_v18 = vadd.f32 1.0, %v659_v50  ;;  %vm745_vm12 = vcmp.eq.s32.totalorder %v743_v49, 1 }
 0x3ae   :  { %669 = vadd.xlane.f32.xlu1 %v668_v52  ;;  %1447 = vmatpush3.bf16.msra.mxu0 %v1446_v13 }
 0x3af   :  { %1391 = vmatprep.mubr.msk.f32.mxu0 %vm1606_vm15, %v1607_v32  ;;  %1394 = vmatprep.subr.mxu0 %v1607_v32  ;;  %v722_v22 = vsub.f32 %v720_v18, %v713_v16 }
 0x41f   :  { %v1866_v54 = vpop.permute.xlu0 %662 }
 0x420   :  { %1392 = vmatmul.mubr.msk.f32.vlgmr.msra.gmra.mrb[10].mxu0 %vm64_vm0, %v1866_v54  ;;  %1400 = vmatpush3.xpose.msk.msra.mxu1 %vm64_vm0, %v1866_v54  ;;  %v671_v55 = vsel %vm667_vm8, %v1866_v54, 0.0  ;;  %v666_v3 = vmul.f32 %v1866_v54, %v1866_v54  ;;  %v721_v30 = vadd.f32 1.0, %v1866_v54 }
 0x421   :  { %1395 = vmatpush3.xpose.msk.msra.mxu0 %vm64_vm0, %v659_v50  ;;  %672 = vadd.xlane.f32.xlu0 %v671_v55 }
 0x422   :  { %1396 = vmatprep.mubr.msk.f32.mxu0 %vm1606_vm15, %v1607_v32  ;;  %1448 = vmatprep.subr.bf16.mxu0 %v1605_v31  ;;  %v723_v35 = vsub.f32 %v721_v30, %v717_v29 }
 0x423   :  { %1451 = vmatprep.subr.bf16.mxu1 %v1605_v31 }
 0x43b   :  { %v670_v31 = vpop.xlane.xlu1 %669 }
 0x43c   :  { %1479 = vrcp.f32 %v670_v31 }
 0x446   :  { %v1480_v56 = vpop.eup %1479 }
 0x447   :  { %v675_v58 = vmul.f32 %v1480_v56, %v665_v57 }
 0x449   :  { %v678_v59 = vsel %vm667_vm8, %v675_v58, 0.0 }
 0x44a   :  { %v679_v60 = vrot.slane %v678_v59, 4 }
 0x44c   :  { %v680_v61 = vadd.f32 %v679_v60, %v678_v59 }
 0x44e   :  { %433 = vxpose.xlu0.b32.start [1/4] (short) (narrow) %v1789_v17, 24  ;;  %v681_v62 = vrot.slane %v680_v61, 2 }
 0x452   :  { %434 = vxpose.xlu0.b32.cont [2/4] (short) (narrow) %v1784_v14, 24  ;;  %v682_v14 = vadd.f32 %v681_v62, %v680_v61 }
 0x454   :  { %v683_v17 = vrot.slane %v682_v14, 1 }
 0x456   :  { %435 = vxpose.xlu0.b32.cont [3/4] (short) (narrow) %v1796_v25, 24  ;;  %v684_v0 = vadd.f32 %v683_v17, %v682_v14 }
 0x458   :  { %v694_v1 = vsel %vm692_vm9, %v684_v0, 1.0 }
 0x459   :  { %v699_v2 = vrot.slane %v694_v1, %v1847_v53 }
 0x45a   :  { %436 = vxpose.xlu0.b32.end [4/4] (short) (narrow) %v1799_v26, 24 }
 0x480   :  { %v832_v9 = vpop.f32.mrb[8].mxu0 }
 0x481   :  { %v1386_v13 = vpop.f32.mrb[9].mxu0  ;;  %1397 = vmatmul.mubr.msk.f32.vlgmr.msra.gmra.mrb[12].mxu0 %vm64_vm0, %v832_v9 }
 0x482   :  { %1450 = vmatpush3.bf16.msra.mxu0 %v1449_v10  ;;  %1408 = vmatprep.mubr.msk.f32.mxu0 %vm1606_vm15, %v1607_v32 }
 0x485   :  { %1409 = vmatmul.mubr.msk.f32.vlgmr.msra.gmra.mrb[14].mxu0 %vm64_vm0, %v659_v50 }
 0x4ae   :  { %v673_v63 = vpop.xlane.xlu0 %672 }
 0x4af   :  { %1481 = vrcp.f32 %v673_v63 }
 0x4b0   :  { %1483 = vrcp.f32 %v699_v2 }
 0x4b1   :  { %1485 = vrcp.f32 %v722_v22 }
 0x4b9   :  { %v1482_v4 = vpop.eup %1481 }
 0x4ba   :  { %v677_v5 = vmul.f32 %v1482_v4, %v666_v3  ;;  %v1484_v21 = vpop.eup %1483 }
 0x4bb   :  { %v705_v27 = vmul.f32 %v1484_v21, %v675_v58  ;;  %v1486_v8 = vpop.eup %1485 }
 0x4bc   :  { %v685_v7 = vsel %vm667_vm8, %v677_v5, 0.0 }
 0x4bd   :  { %v686_v11 = vrot.slane %v685_v7, 4  ;;  %v708_v34 = vadd.f32 1.0, %v705_v27 }
 0x4bf   :  { %v687_v15 = vadd.f32 %v686_v11, %v685_v7  ;;  %v718_v6 = vsub.f32 %v708_v34, %v713_v16 }
 0x4c1   :  { %v688_v19 = vrot.slane %v687_v15, 2  ;;  %v725_v12 = vmul.f32 %v1486_v8, %v718_v6 }
 0x4c3   :  { %v689_v20 = vadd.f32 %v688_v19, %v687_v15 }
 0x4c5   :  { %v690_v23 = vrot.slane %v689_v20, 1 }
 0x4c7   :  { %v691_v24 = vadd.f32 %v690_v23, %v689_v20 }
 0x4c9   :  { %v695_v28 = vsel %vm693_vm10, %v691_v24, 1.0 }
 0x4ca   :  { %v703_v33 = vrot.slane %v695_v28, %v1847_v53 }
 0x4cc   :  { %1487 = vrcp.f32 %v703_v33 }
 0x4cd   :  { %1489 = vrcp.f32 %v723_v35 }
 0x4ce   :  { %1491 = vlog2.f32 %v725_v12  ;;  %v449_v53 = vpop.trf.xlu0 }
 0x4cf   :  { %465 = vst.msk [vmem:[%s1995_s10] sm:$0xff] %vm185_vm3, %v449_v53 }
 0x4d2   :  { %v450_v59 = vpop.trf.xlu0 }
 0x4d3   :  { %466 = vst.msk [vmem:[%s1995_s10 + $0x8] sm:$0xff] %vm185_vm3, %v450_v59 }
 0x4d6   :  { %v1488_v37 = vpop.eup %1487  ;;  %v451_v25 = vpop.trf.xlu0 }
 0x4d7   :  { %v707_v38 = vmul.f32 %v1488_v37, %v677_v5  ;;  %v1490_v41 = vpop.eup %1489  ;;  %467 = vst.msk [vmem:[%s1995_s10 + $0x10] sm:$0xff] %vm185_vm3, %v451_v25 }
 0x4d8   :  { %v1492_v43 = vpop.eup %1491 }
 0x4d9   :  { %v709_v39 = vadd.f32 1.0, %v707_v38  ;;  %v729_v47 = vmul.f32 0.6931472, %v1492_v43 }
 0x4db   :  { %v719_v40 = vsub.f32 %v709_v39, %v717_v29  ;;  %v732_v50 = vmul.f32 %v729_v47, %v718_v6 }
 0x4dd   :  { %v727_v42 = vmul.f32 %v1490_v41, %v719_v40  ;;  %v746_v10 = vsel %vm744_vm11, %v732_v50, 0.0 }
 0x4de   :  { %v748_v31 = vsel %vm667_vm8, %v746_v10, 0.0 }
 0x4df   :  { %1493 = vlog2.f32 %v727_v42 }
 0x4e9   :  { %v1494_v52 = vpop.eup %1493 }
 0x4ea   :  { %v731_v55 = vmul.f32 0.6931472, %v1494_v52 }
 0x4ec   :  { %v733_v9 = vmul.f32 %v731_v55, %v719_v40 }
 0x4ee   :  { %v747_v13 = vsel %vm745_vm12, %v733_v9, 0.0 }
 0x4ef   :  { %v749_v51 = vsel %vm667_vm8, %v747_v13, 0.0 }
 0x4f0   :  { %v750_v56 = vadd.f32 %v749_v51, %v748_v31 }
 0x4f2   :  { %751 = vadd.xlane.f32.xlu1 %v750_v56 }
 0x4f3   :  { %v904_v57 = vpop.f32.mrb[10].mxu0 }
 0x4f4   :  { %v1393_v58 = vpop.f32.mrb[11].mxu0  ;;  %1402 = vmatmul.mubr.msk.f32.vlgmr.msra.gmra.mrb[6].mxu1 %vm64_vm0, %v904_v57 }
 0x4f5   :  { %1453 = vmatpush3.bf16.msra.mxu1 %v1452_v36  ;;  %1415 = vmatprep.mubr.msk.f32.mxu1 %vm1606_vm15, %v1607_v32 }
 0x4f8   :  { %1416 = vmatmul.mubr.msk.f32.vlgmr.msra.gmra.mrb[8].mxu1 %vm64_vm0, %v1866_v54 }
 0x4f9   :  { %1518 = shalt.err (!%p1515_p9)
}
 0x4fa   :  { %s1519_s25 = scalar_lea.hbm %s1996_s11, 64 }
 0x4fb   :  { %p1520_p10 = scmp.ne.s32.totalorder %s1996_s11, %s1519_s25  ;;  %p1523_p11 = scmp.lt.u32.totalorder %s1519_s25, %s1996_s11 }
 0x4fd   :  { %p1525_p12 = pnand %p1523_p11, %p1520_p10 }
 0x4ff   :  { %1528 = shalt.err (!%p1525_p12)
}
 0x500   :  { %1211 = dma.vmem_to_hbm [thread:$0]  %s1209_s22, 64, %s1996_s11, [#allocation5]   ;;  %vm1054_vm0 = vcmask 27648   ;;  %vm1197_vm3 = vcmask 191488   ;;  %vm762_vm13 = vcmask 0  }
 0x501   :  { %s1611_s4 = smov [#allocation9]   ;;  %s1612_s30 = smov [#allocation6]  }
 0x502   :  { %s1242_s11 = sshll.u32 %s1611_s4, 4  ;;  %s1217_s6 = sshll.u32 %s1612_s30, 4  ;;  %s1243_s11 = int_to_ptr.vmem [resolvable:$true] %s1242_s11  ;;  %s1218_s6 = int_to_ptr.vmem [resolvable:$true] %s1217_s6 }
 0x503   :  { %s1529_s15 = scalar_lea.vmem %s1243_s11, 16  ;;  %s1533_s16 = scalar_lea.vmem %s1243_s11, 32 }
 0x504   :  { %p1530_p13 = scmp.ne.s32.totalorder %s1243_s11, %s1529_s15  ;;  %p1534_p0 = scmp.lt.s32.totalorder %s1243_s11, %s1243_s11 }
 0x505   :  { %p1535_p1 = scmp.lt.s32.totalorder %s1533_s16, %s1529_s15 }
 0x507   :  { %p1536_p2 = por %p1535_p1, %p1534_p0 }
 0x509   :  { %p1537_p3 = pnand %p1536_p2, %p1530_p13 }
 0x554   :  { %v977_v26 = vpop.f32.mrb[12].mxu0 }
 0x555   :  { %1055 = vst.msk [vmem:[#allocation6] sm:$0xf] %vm1054_vm0, %v977_v26  ;;  %v1398_v32 = vpop.f32.mrb[13].mxu0 }
 0x558   :  { %v1123_v54 = vpop.f32.mrb[14].mxu0 }
 0x559   :  { %1198 = vst.msk [vmem:[#allocation8] sm:$0xf] %vm1197_vm3, %v1123_v54  ;;  %v1410_v60 = vpop.f32.mrb[15].mxu0 }
 0x57f   :  { %v752_v61 = vpop.xlane.xlu1 %751 }
 0x580   :  { %v753_v62 = vrot.slane %v752_v61, 4 }
 0x582   :  { %v754_v14 = vadd.f32 %v753_v62, %v752_v61 }
 0x584   :  { %v755_v17 = vrot.slane %v754_v14, 2 }
 0x586   :  { %v756_v63 = vadd.f32 %v755_v17, %v754_v14 }
 0x588   :  { %v757_v0 = vrot.slane %v756_v63, 1 }
 0x58a   :  { %v758_v1 = vadd.f32 %v757_v0, %v756_v63 }
 0x58c   :  { %1454 = vpush %v758_v1 }
 0x5bd   :  { %s1455_s8 = spop %1454 }
 0x5be   :  { %s760_s29 = smul.f32 100.0, %s1455_s8 }
 0x5c0   :  { %v761_v2 = vstv %s760_s29 }
 0x5c1   :  { %763 = vst.msk [vmem:[#allocation9] sm:$0x1] %vm762_vm13, %v761_v2 }
 0x5c2   :  { %1540 = shalt.err (!%p1537_p3)
}
 0x5c3   :  { %s1541_s7 = scalar_lea.hbm %s1999_s14, 16 }
 0x5c4   :  { %p1542_p4 = scmp.ne.s32.totalorder %s1999_s14, %s1541_s7  ;;  %p1545_p5 = scmp.lt.u32.totalorder %s1541_s7, %s1999_s14 }
 0x5c6   :  { %p1547_p6 = pnand %p1545_p5, %p1542_p4 }
 0x5c8   :  { %1550 = shalt.err (!%p1547_p6)
}
 0x5c9   :  { %1245 = dma.vmem_to_hbm [thread:$0]  %s1243_s11, 16, %s1999_s14, [#allocation10]   ;;  %v1050_v3 = vpop.f32.mrb[6].mxu1 }
 0x5ca   :  { %s1613_s22 = smov [#allocation8]   ;;  %1056 = vst.msk [vmem:[#allocation6 + $0x4] sm:$0xf] %vm1054_vm0, %v1050_v3  ;;  %v1403_v4 = vpop.f32.mrb[7].mxu1  ;;  %s1551_s23 = scalar_lea.vmem %s1218_s6, 128 }
 0x5cb   :  { %s1229_s1 = sshll.u32 %s1613_s22, 4  ;;  %p1552_p7 = scmp.ne.s32.totalorder %s1218_s6, %s1551_s23  ;;  %s1230_s1 = int_to_ptr.vmem [resolvable:$true] %s1229_s1 }
 0x5cc   :  { %p1556_p8 = scmp.lt.s32.totalorder %s1218_s6, %s1218_s6  ;;  %p1557_p9 = scmp.lt.s32.totalorder %s1551_s23, %s1551_s23 }
 0x5ce   :  { %p1558_p10 = por %p1557_p9, %p1556_p8 }
 0x5d0   :  { %p1559_p11 = pnand %p1558_p10, %p1552_p7 }
 0x5d2   :  { %1562 = shalt.err (!%p1559_p11)
}
 0x5d3   :  { %s1563_s26 = scalar_lea.hbm %s1997_s12, 128 }
 0x5d4   :  { %p1564_p12 = scmp.ne.s32.totalorder %s1997_s12, %s1563_s26  ;;  %p1567_p13 = scmp.lt.u32.totalorder %s1563_s26, %s1997_s12 }
 0x5d6   :  { %p1569_p0 = pnand %p1567_p13, %p1564_p12 }
 0x5d8   :  { %1572 = shalt.err (!%p1569_p0)
}
 0x5d9   :  { %s1614_s3 = smov 64   ;;  %s1615_s5 = smov 4   ;;  %v1193_v5 = vpop.f32.mrb[8].mxu1 }
 0x5da   :  { %1223 = dma.vmem_to_hbm [thread:$0]  %s1218_s6, 128, %s1997_s12, [#allocation7], %s1614_s3, %s1614_s3, %s1615_s5   ;;  %1199 = vst.msk [vmem:[#allocation8 + $0x4] sm:$0xf] %vm1197_vm3, %v1193_v5  ;;  %v1417_v7 = vpop.f32.mrb[9].mxu1 }
 0x5db   :  { %s1573_s8 = scalar_lea.vmem %s1230_s1, 128  ;;  %p1578_p2 = scmp.lt.s32.totalorder %s1230_s1, %s1230_s1 }
 0x5dc   :  { %p1574_p1 = scmp.ne.s32.totalorder %s1230_s1, %s1573_s8  ;;  %p1579_p3 = scmp.lt.s32.totalorder %s1573_s8, %s1573_s8 }
 0x5de   :  { %p1580_p4 = por %p1579_p3, %p1578_p2 }
 0x5e0   :  { %p1581_p5 = pnand %p1580_p4, %p1574_p1 }
 0x5e2   :  { %1584 = shalt.err (!%p1581_p5)
}
 0x5e3   :  { %s1585_s15 = scalar_lea.hbm %s1998_s13, 128 }
 0x5e4   :  { %p1586_p6 = scmp.ne.s32.totalorder %s1998_s13, %s1585_s15  ;;  %p1589_p7 = scmp.lt.u32.totalorder %s1585_s15, %s1998_s13 }
 0x5e6   :  { %p1591_p8 = pnand %p1589_p7, %p1586_p6 }
 0x5e8   :  { %1594 = shalt.err (!%p1591_p8)
}
 0x5e9   :  { %1235 = dma.vmem_to_hbm [thread:$0]  %s1230_s1, 128, %s1998_s13, [#allocation7], %s1614_s3, %s1614_s3, %s1615_s5  }
 0x5ea   :  { %1597 = dma.done.wait [#allocation5], 64  }
 0x5eb   :  { %1598 = vsyncadd [#allocation5], 4294967232 }
 0x5ec   :  { %1599 = dma.done.wait [#allocation7], 256  }
 0x5ed   :  { %1600 = vsyncadd [#allocation7], 4294967040 }
 0x5ee   :  { %1601 = dma.done.wait [#allocation10], 16  }
 0x5ef   :  { %1602 = vsyncadd [#allocation10], 4294967280 }
 0x5f0   :  { %1260 = vsyncpa [#allocation5], 1 }
 0x5f1   :  { %1261 = vsyncpa [#allocation7], 1 }
 0x5f2   :  { %1262 = vsyncpa [#allocation10], 1 }

</bundles_post_ra>
